<compile_context>
chip_gen: v5e
topology: v5e:2x2
jax: 0.10.0
libtpu: 0.0.40
codegen_flags: <defaults>
</compile_context>

<pallas_src>
import functools

import jax
import jax.numpy as jnp
from jax.experimental import pallas as pl
from jax.experimental.pallas import tpu as pltpu


def _round_up(x: int, m: int) -> int:
    return ((x + m - 1) // m) * m


# ----------------------------------------------------------------------------
# Pallas kernel: K-tiled  acc += x_tile @ W1_tile ; finalize -> ReLU, head matmul
# ----------------------------------------------------------------------------
def _backbone_kernel(x_ref, w1_ref, b1_ref, w2_ref, b2_ref, *rest, want_feat):
    if want_feat:
        out_ref, feat_ref, acc_ref = rest
    else:
        out_ref, acc_ref = rest
        feat_ref = None

    k = pl.program_id(1)

    @pl.when(k == 0)
    def _init():
        acc_ref[...] = jnp.zeros_like(acc_ref)

    # Partial product for this K tile: bf16 x bf16 -> f32 accumulation.
    acc_ref[...] += jnp.dot(x_ref[...], w1_ref[...],
                            preferred_element_type=jnp.float32)

    @pl.when(k == pl.num_programs(1) - 1)
    def _finalize():
        # Bias + ReLU only once, after the full K reduction (f32 epilogue).
        feat = jnp.maximum(acc_ref[...] + b1_ref[...], 0.0)
        if want_feat:
            feat_ref[...] = feat.astype(feat_ref.dtype)
        # Head matmul straight off the in-VMEM feature tile (no HBM round trip).
        out = jnp.dot(feat.astype(w2_ref.dtype), w2_ref[...],
                      preferred_element_type=jnp.float32) + b2_ref[...]
        out_ref[...] = out.astype(out_ref.dtype)


def _run_backbone(x_flat, w1, b1, w2, b2, want_feat):
    B, D = x_flat.shape
    H = w1.shape[1]
    C = w2.shape[1]

    # Tile sizes: batch rows on sublanes, hidden / class lane-dense (mult of 128).
    # Sized conservatively for the v7x 64 MiB VMEM budget with double buffering.
    TB = min(256, _round_up(B, 8))
    Bp = _round_up(B, TB)
    TK = min(512, _round_up(D, 128))
    Dp = _round_up(D, TK)
    Hp = _round_up(H, 128)
    Cp = _round_up(C, 128)

    # Zero padding contributes nothing to either matmul; padded rows/cols are
    # sliced away below.  Matmul operands go to bf16 (f32 accumulation inside).
    xp = jnp.zeros((Bp, Dp), jnp.bfloat16).at[:B, :D].set(x_flat.astype(jnp.bfloat16))
    w1p = jnp.zeros((Dp, Hp), jnp.bfloat16).at[:D, :H].set(w1.astype(jnp.bfloat16))
    b1p = jnp.zeros((1, Hp), jnp.float32).at[:, :H].set(b1.astype(jnp.float32))
    w2p = jnp.zeros((Hp, Cp), jnp.bfloat16).at[:H, :C].set(w2.astype(jnp.bfloat16))
    b2p = jnp.zeros((1, Cp), jnp.float32).at[:, :C].set(b2.astype(jnp.float32))

    grid = (Bp // TB, Dp // TK)

    out_shape = [jax.ShapeDtypeStruct((Bp, Cp), jnp.float32)]
    out_specs = [pl.BlockSpec((TB, Cp), lambda i, k: (i, 0))]
    if want_feat:
        out_shape.append(jax.ShapeDtypeStruct((Bp, Hp), jnp.float32))
        out_specs.append(pl.BlockSpec((TB, Hp), lambda i, k: (i, 0)))

    flops = 2 * Bp * Dp * Hp + 2 * Bp * Hp * Cp
    bytes_accessed = (
        Bp * Dp * 2 + Dp * Hp * 2 + Hp * Cp * 2      # x, W1, W2 (bf16)
        + Hp * 4 + Cp * 4                            # biases (f32)
        + Bp * Cp * 4 + (Bp * Hp * 4 if want_feat else 0)   # outputs (f32)
    )

    results = pl.pallas_call(
        functools.partial(_backbone_kernel, want_feat=want_feat),
        grid=grid,
        in_specs=[
            pl.BlockSpec((TB, TK), lambda i, k: (i, k)),   # x tile
            pl.BlockSpec((TK, Hp), lambda i, k: (k, 0)),   # W1 K-tile
            pl.BlockSpec((1, Hp), lambda i, k: (0, 0)),    # b1 (resident)
            pl.BlockSpec((Hp, Cp), lambda i, k: (0, 0)),   # W2 (resident)
            pl.BlockSpec((1, Cp), lambda i, k: (0, 0)),    # b2 (resident)
        ],
        out_specs=out_specs,
        out_shape=out_shape,
        scratch_shapes=[pltpu.VMEM((TB, Hp), jnp.float32)],
        compiler_params=pltpu.CompilerParams(
            dimension_semantics=("parallel", "arbitrary"),
            vmem_limit_bytes=48 * 1024 * 1024,
        ),
        cost_estimate=pl.CostEstimate(
            flops=flops, transcendentals=0, bytes_accessed=bytes_accessed),
    )(xp, w1p, b1p, w2p, b2p)

    out = results[0][:B, :C]
    feat = results[1][:B, :H] if want_feat else None
    return out, feat


# ----------------------------------------------------------------------------
# Python wrapper mirroring the MammothBackbone interface
# ----------------------------------------------------------------------------
class MammothBackbone:
    def __init__(self, in_features: int, hidden: int, num_classes: int, key):
        k1, k2 = jax.random.split(key)
        scale1 = 1.0 / jnp.sqrt(in_features)
        scale2 = 1.0 / jnp.sqrt(hidden)
        # Master params kept in f32 (get_params/set_params semantics); the
        # kernel casts matmul operands to bf16 internally.
        self.w1 = jax.random.normal(k1, (in_features, hidden), jnp.float32) * scale1
        self.b1 = jnp.zeros((1, hidden), jnp.float32)
        self.w2 = jax.random.normal(k2, (hidden, num_classes), jnp.float32) * scale2
        self.b2 = jnp.zeros((1, num_classes), jnp.float32)

    def _params(self):
        return [self.w1, self.b1, self.w2, self.b2]

    def forward(self, x, returnt="out"):
        # x: NCHW (batch, C, H, W) -> flatten exactly like torch .view(N, -1)
        B = x.shape[0]
        x_flat = x.reshape(B, -1).astype(jnp.float32)
        want_feat = returnt in ("features", "all")
        out, feat = _run_backbone(x_flat, self.w1, self.b1, self.w2, self.b2,
                                  want_feat)
        if returnt == "out":
            return out
        if returnt == "features":
            return feat
        if returnt == "all":
            return out, feat
        raise NotImplementedError("unknown returnt")
        # TODO(synk): the original base-class forward is abstract (raises
        # NotImplementedError); this is a minimal concrete realization.

    def features(self, x):
        return self.forward(x, returnt="features")

    def get_params(self):
        return jnp.concatenate([p.reshape(-1) for p in self._params()])

    def set_params(self, new_params):
        flat = self.get_params()
        assert new_params.shape == flat.shape
        progress = 0
        new_list = []
        for p in self._params():
            n = p.size
            new_list.append(new_params[progress:progress + n].reshape(p.shape))
            progress += n
        self.w1, self.b1, self.w2, self.b2 = new_list

    # TODO(synk): get_grads/get_grads_list depend on torch autograd state
    # (pp.grad); in JAX gradients are produced functionally via jax.grad, so
    # there is no stored-grad equivalent to concatenate here.


if __name__ == "__main__":
    key = jax.random.PRNGKey(0)
    k_x, k_p = jax.random.split(key)

    # Small shapes consistent with an NCHW backbone input.
    B, C, Hs, Ws = 2, 4, 16, 16
    hidden, num_classes = 32, 10

    x = jax.random.normal(k_x, (B, C, Hs, Ws), jnp.float32)
    model = MammothBackbone(C * Hs * Ws, hidden, num_classes, k_p)

    # 'all' path (writes both outputs) and 'out' path (skips feat store).
    out_all, feat = model.forward(x, returnt="all")
    out_only = model.forward(x, returnt="out")
    out_all = jax.block_until_ready(out_all)
    feat = jax.block_until_ready(feat)
    out_only = jax.block_until_ready(out_only)

    # Reference using the same bf16 operand quantization (f32 accumulation).
    x_flat = x.reshape(B, -1)
    xb = x_flat.astype(jnp.bfloat16)
    w1b = model.w1.astype(jnp.bfloat16)
    w2b = model.w2.astype(jnp.bfloat16)
    feat_ref = jnp.maximum(
        jnp.dot(xb, w1b, preferred_element_type=jnp.float32) + model.b1, 0.0)
    out_ref = jnp.dot(feat_ref.astype(jnp.bfloat16), w2b,
                      preferred_element_type=jnp.float32) + model.b2

    assert out_all.shape == (B, num_classes) and feat.shape == (B, hidden)
    assert jnp.allclose(out_all, out_ref, atol=1e-2, rtol=1e-2)
    assert jnp.allclose(out_only, out_ref, atol=1e-2, rtol=1e-2)
    assert jnp.allclose(feat, feat_ref, atol=1e-2, rtol=1e-2)

    # Loose check against the pure-f32 reference (bf16 quantization error only).
    feat_f32 = jnp.maximum(x_flat @ model.w1 + model.b1, 0.0)
    out_f32 = feat_f32 @ model.w2 + model.b2
    assert jnp.allclose(out_all, out_f32, atol=5e-2, rtol=5e-2)

    # Interface smoke tests (get_params / set_params round trip).
    p = model.get_params()
    model.set_params(p)

    print("KERNEL_OK")
</pallas_src>

<mosaic_0001>
module attributes {stable_mosaic.version = 11 : i64} {
  func.func @_backbone_kernel(%arg0: i32, %arg1: i32, %arg2: memref<8x512xbf16, #tpu.memory_space<vmem>>, %arg3: memref<512x128xbf16, #tpu.memory_space<vmem>>, %arg4: memref<1x128xf32, #tpu.memory_space<vmem>>, %arg5: memref<128x128xbf16, #tpu.memory_space<vmem>>, %arg6: memref<1x128xf32, #tpu.memory_space<vmem>>, %arg7: memref<8x128xf32, #tpu.memory_space<vmem>>, %arg8: memref<8x128xf32, #tpu.memory_space<vmem>>, %arg9: memref<8x128xf32, #tpu.memory_space<vmem>>) attributes {dimension_semantics = [#tpu.dimension_semantics<parallel>, #tpu.dimension_semantics<arbitrary>], iteration_bounds = array<i64: 1, 2>, scalar_prefetch = 0 : i64, scratch_operands = 1 : i64, tpu.core_type = #tpu.core_type<tc>, window_params = [{transform_indices = @transform_0, window_bounds = array<i64: 8, 512>}, {transform_indices = @transform_1, window_bounds = array<i64: 512, 128>}, {pipeline_mode = #tpu.pipeline_mode<synchronous>, transform_indices = @transform_2, window_bounds = array<i64: 1, 128>}, {pipeline_mode = #tpu.pipeline_mode<synchronous>, transform_indices = @transform_3, window_bounds = array<i64: 128, 128>}, {pipeline_mode = #tpu.pipeline_mode<synchronous>, transform_indices = @transform_4, window_bounds = array<i64: 1, 128>}, {transform_indices = @transform_5, window_bounds = array<i64: 8, 128>}, {transform_indices = @transform_6, window_bounds = array<i64: 8, 128>}]} {
    %c0_i32 = arith.constant 0 : i32
    %0 = arith.cmpi eq, %arg1, %c0_i32 : i32
    %1 = arith.extui %0 : i1 to i32
    %c0_i32_0 = arith.constant 0 : i32
    %2 = arith.cmpi ne, %1, %c0_i32_0 : i32
    scf.if %2 {
      %cst_9 = arith.constant 0.000000e+00 : f32
      %12 = vector.broadcast %cst_9 : f32 to vector<8x128xf32>
      %c0_10 = arith.constant 0 : index
      %c0_11 = arith.constant 0 : index
      %13 = vector.load %arg9[%c0_10, %c0_11] : memref<8x128xf32, #tpu.memory_space<vmem>>, vector<8x128xf32>
      tpu.vector_store %arg9[%c0_10, %c0_11], %12 {strides = array<i32>} : memref<8x128xf32, #tpu.memory_space<vmem>>, vector<8x128xf32>,
    } else {
    }
    %c0 = arith.constant 0 : index
    %c0_1 = arith.constant 0 : index
    %3 = vector.load %arg9[%c0, %c0_1] : memref<8x128xf32, #tpu.memory_space<vmem>>, vector<8x128xf32>
    %c0_2 = arith.constant 0 : index
    %c0_3 = arith.constant 0 : index
    %4 = vector.load %arg2[%c0_2, %c0_3] : memref<8x512xbf16, #tpu.memory_space<vmem>>, vector<8x512xbf16>
    %c0_4 = arith.constant 0 : index
    %c0_5 = arith.constant 0 : index
    %5 = vector.load %arg3[%c0_4, %c0_5] : memref<512x128xbf16, #tpu.memory_space<vmem>>, vector<512x128xbf16>
    %cst = arith.constant dense<0.000000e+00> : vector<8x128xf32>
    %6 = tpu.matmul %4, %5, %cst {dimension_numbers = #tpu.dot_dimension_numbers<[1], [0], [0], [1], [0, 0, 1, 1], [], []>} : vector<8x512xbf16>, vector<512x128xbf16>, vector<8x128xf32> -> vector<8x128xf32>
    %7 = arith.addf %3, %6 : vector<8x128xf32>
    %c0_6 = arith.constant 0 : index
    %c0_7 = arith.constant 0 : index
    %8 = vector.load %arg9[%c0_6, %c0_7] : memref<8x128xf32, #tpu.memory_space<vmem>>, vector<8x128xf32>
    tpu.vector_store %arg9[%c0_6, %c0_7], %7 {strides = array<i32>} : memref<8x128xf32, #tpu.memory_space<vmem>>, vector<8x128xf32>,
    %c1_i32 = arith.constant 1 : i32
    %9 = arith.cmpi eq, %arg1, %c1_i32 : i32
    %10 = arith.extui %9 : i1 to i32
    %c0_i32_8 = arith.constant 0 : i32
    %11 = arith.cmpi ne, %10, %c0_i32_8 : i32
    scf.if %11 {
      %c0_9 = arith.constant 0 : index
      %c0_10 = arith.constant 0 : index
      %12 = vector.load %arg9[%c0_9, %c0_10] : memref<8x128xf32, #tpu.memory_space<vmem>>, vector<8x128xf32>
      %c0_11 = arith.constant 0 : index
      %c0_12 = arith.constant 0 : index
      %13 = vector.load %arg4[%c0_11, %c0_12] : memref<1x128xf32, #tpu.memory_space<vmem>>, vector<1x128xf32>
      %14 = vector.broadcast %13 : vector<1x128xf32> to vector<8x128xf32>
      %15 = arith.addf %12, %14 : vector<8x128xf32>
      %cst_13 = arith.constant 0.000000e+00 : f32
      %16 = vector.broadcast %cst_13 : f32 to vector<8x128xf32>
      %17 = arith.maximumf %15, %16 : vector<8x128xf32>
      %c0_14 = arith.constant 0 : index
      %c0_15 = arith.constant 0 : index
      %18 = vector.load %arg8[%c0_14, %c0_15] : memref<8x128xf32, #tpu.memory_space<vmem>>, vector<8x128xf32>
      tpu.vector_store %arg8[%c0_14, %c0_15], %17 {strides = array<i32>} : memref<8x128xf32, #tpu.memory_space<vmem>>, vector<8x128xf32>,
      %19 = arith.truncf %17 : vector<8x128xf32> to vector<8x128xbf16>
      %c0_16 = arith.constant 0 : index
      %c0_17 = arith.constant 0 : index
      %20 = vector.load %arg5[%c0_16, %c0_17] : memref<128x128xbf16, #tpu.memory_space<vmem>>, vector<128x128xbf16>
      %cst_18 = arith.constant dense<0.000000e+00> : vector<8x128xf32>
      %21 = tpu.matmul %19, %20, %cst_18 {dimension_numbers = #tpu.dot_dimension_numbers<[1], [0], [0], [1], [0, 0, 1, 1], [], []>} : vector<8x128xbf16>, vector<128x128xbf16>, vector<8x128xf32> -> vector<8x128xf32>
      %c0_19 = arith.constant 0 : index
      %c0_20 = arith.constant 0 : index
      %22 = vector.load %arg6[%c0_19, %c0_20] : memref<1x128xf32, #tpu.memory_space<vmem>>, vector<1x128xf32>
      %23 = vector.broadcast %22 : vector<1x128xf32> to vector<8x128xf32>
      %24 = arith.addf %21, %23 : vector<8x128xf32>
      %c0_21 = arith.constant 0 : index
      %c0_22 = arith.constant 0 : index
      %25 = vector.load %arg7[%c0_21, %c0_22] : memref<8x128xf32, #tpu.memory_space<vmem>>, vector<8x128xf32>
      tpu.vector_store %arg7[%c0_21, %c0_22], %24 {strides = array<i32>} : memref<8x128xf32, #tpu.memory_space<vmem>>, vector<8x128xf32>,
    } else {
    }
    return
  }
  func.func @transform_0(%arg0: i32, %arg1: i32) -> (i32, i32) {
    %c0_i32 = arith.constant 0 : i32
    return %arg0, %arg1 : i32, i32
  }
  func.func @transform_1(%arg0: i32, %arg1: i32) -> (i32, i32) {
    %c0_i32 = arith.constant 0 : i32
    %c0_i32_0 = arith.constant 0 : i32
    return %arg1, %c0_i32 : i32, i32
  }
  func.func @transform_2(%arg0: i32, %arg1: i32) -> (i32, i32) {
    %c0_i32 = arith.constant 0 : i32
    %c0_i32_0 = arith.constant 0 : i32
    %c0_i32_1 = arith.constant 0 : i32
    return %c0_i32, %c0_i32_0 : i32, i32
  }
  func.func @transform_3(%arg0: i32, %arg1: i32) -> (i32, i32) {
    %c0_i32 = arith.constant 0 : i32
    %c0_i32_0 = arith.constant 0 : i32
    %c0_i32_1 = arith.constant 0 : i32
    return %c0_i32, %c0_i32_0 : i32, i32
  }
  func.func @transform_4(%arg0: i32, %arg1: i32) -> (i32, i32) {
    %c0_i32 = arith.constant 0 : i32
    %c0_i32_0 = arith.constant 0 : i32
    %c0_i32_1 = arith.constant 0 : i32
    return %c0_i32, %c0_i32_0 : i32, i32
  }
  func.func @transform_5(%arg0: i32, %arg1: i32) -> (i32, i32) {
    %c0_i32 = arith.constant 0 : i32
    %c0_i32_0 = arith.constant 0 : i32
    return %arg0, %c0_i32 : i32, i32
  }
  func.func @transform_6(%arg0: i32, %arg1: i32) -> (i32, i32) {
    %c0_i32 = arith.constant 0 : i32
    %c0_i32_0 = arith.constant 0 : i32
    return %arg0, %c0_i32 : i32, i32
  }
}

</mosaic_0001>

<bundles_post_ra>
// kernel: tpu_custom_call.1
= control target key start
LH: loop header
LB: loop body
LE: loop exit
PB: predicated region body
PF: predicated region fallthrough
CT: control target
= control target key end

     0   :  { %s1665_s0 = inlined_call_operand.hbm [shape: bf16[8,1024], index: 0, kind: input, shape index: {}]   ;;  %s1666_s1 = inlined_call_operand.hbm [shape: bf16[1024,128], index: 1, kind: input, shape index: {}]   ;;  %s1667_s2 = inlined_call_operand.vmem [shape: f32[1,128], index: 2, kind: input, shape index: {}]   ;;  %s1668_s3 = inlined_call_operand.hbm [shape: bf16[128,128], index: 3, kind: input, shape index: {}]   ;;  %s1669_s4 = inlined_call_operand.vmem [shape: f32[1,128], index: 4, kind: input, shape index: {}]   ;;  %s1670_s5 = inlined_call_operand.hbm [shape: f32[8,128], index: 5, kind: output, shape index: {0}]   ;;  %s1671_s6 = inlined_call_operand.hbm [shape: f32[8,128], index: 6, kind: output, shape index: {1}]  }
   0x1   :  { %1676 = sst [smem:[#allocation20_spill]] %s1668_s3 }
   0x2   :  { %12 = vsyncpa [#allocation4], 0 }
   0x3   :  { %14 = vsyncpa [#allocation4 + $0x1], 0 }
   0x4   :  { %15 = vsyncpa [#allocation7], 0 }
   0x5   :  { %17 = vsyncpa [#allocation7 + $0x1], 0 }
   0x6   :  { %18 = vsyncpa [#allocation5], 0 }
   0x7   :  { %19 = vsyncpa [#allocation11], 0  ;;  %s1474_s21 = smov 0   ;;  %s1476_s22 = smov 0  }
   0x8   :  { %s1478_s23 = smov 0   ;;  %s1480_s24 = smov 0  }
   0x9   :  { %s1482_s25 = smov 0   ;;  %s1484_s26 = smov 0  }
   0xa LB: > { %1677 = sst [smem:[#allocation17_spill]] %s1419_s23  ;;  %s1505_s27 = sadd.s32 4294967295, %s1431_s26   ;;  %s1431_s26 = sphi %s1484_s26, %s25_s26   ;;  %s1427_s25 = sphi %s1482_s25, %s1692_s25   ;;  %s1423_s24 = sphi %s1480_s24, %s1691_s24   ;;  %s1419_s23 = sphi %s1478_s23, %s1687_s23   ;;  %s1415_s22 = sphi %s1476_s22, %s1690_s22   ;;  %s1411_s21 = sphi %s1474_s21, %s1689_s21  }
   0xb   : > { %p906_p0 = scmp.ge.s32.totalorder %s1431_s26, 1  ;;  %p60_p1 = scmp.eq.s32.totalorder %s1505_s27, 0 }
   0xc   : > { %p211_p2 = scmp.lt.s32.totalorder %s1431_s26, 3  ;;  %s1678_s3 = sld [smem:[#allocation20_spill]] }
   0xd   : > { %s1433_s8 = smov [#allocation8]   ;;  %s1672_s10 = smov 64  }
   0xe   : > { %p1513_p3 = pnand %p906_p0, %p211_p2  ;;  %s227_s9 = sshll.u32 %s1433_s8, 4  ;;  %s228_s9 = int_to_ptr.vmem [resolvable:$true] %s227_s9 }
   0xf   : > { %s1673_s11 = smov 4   ;;  %s34_s12 = sadd.s32 1, %s1427_s25 }
  0x10   : > { %p1145_p4 = pneg %p1513_p3  ;;  %p35_p6 = scmp.ge.s32.totalorder %s34_s12, 2 }
  0x11   : > { %s46_s13 = sadd.s32 1, %s1419_s23  ;;  %p53_p7 = scmp.ne.s32.totalorder %s1419_s23, %s1415_s22 }
  0x12   : > { %s225_s30 = sshll.u32 %s1678_s3, 4  ;;  %p1146_p5 = pnand %p1145_p4, %p60_p1  ;;  %s226_s30 = int_to_ptr.hbm [resolvable:$true] %s225_s30 }
  0x13   : > { %p54_p8 = scmp.eq.s32.totalorder %s1431_s26, 0  ;;  %s1694_s12 = smov (%p35_p6, %s34_s12), 0 }
  0x14   : > { %1148 = dma.hbm_to_vmem [thread:$0]  (!%p1146_p5), %s226_s30, 1024, %s228_s9, [#allocation7], %s1672_s10, %s1672_s10, %s1673_s11  }
  0x15   : > { %1680 = sst [smem:[#allocation18_spill]] %s1694_s12  ;;  %p1531_p9 = por %p54_p8, %p53_p7 }
  0x16   : > { %p59_p10 = scmp.ne.s32.totalorder %s1415_s22, %s1411_s21  ;;  %s42_s15 = ssub.s32 %s1427_s25, %s1694_s12 }
  0x17   : > { %p1157_p11 = scmp.lt.s32.totalorder %s1431_s26, 2  ;;  %p44_p12 = scmp.eq.s32.totalorder %s42_s15, 0 }
  0x18   : > { %p1542_p13 = por %p60_p1, %p59_p10  ;;  %s244_s17 = sand.u32 1, %s1419_s23  }
  0x19   : > { %s1087_s18 = sshll.u32 %s1427_s25, 4  ;;  %s909_s20 = sshll.u32 %s244_s17, 4 }
  0x1a   : > { %s1549_s19 = scalar_select %p44_p12, %s1419_s23, %s46_s13  }
  0x1b   : > { %s255_s30 = scalar_lea.hbm %s1665_s0, %s1087_s18  ;;  %s248_s8 = scalar_lea.vmem [#allocation3], %s909_s20 }
  0x1c   : > { %1683 = sst [smem:[#allocation19_spill]] %s1549_s19  ;;  %s257_s21 = sshll.u32 %s255_s30, 4  ;;  %s258_s21 = int_to_ptr.hbm [resolvable:$true] %s257_s21 }
  0x1d   : > { %s259_s9 = sshll.u32 %s248_s8, 4  ;;  %p1150_p0 = pnand %p1157_p11, %p1531_p9  ;;  %s260_s9 = int_to_ptr.vmem [resolvable:$true] %s259_s9 }
  0x1e   : > { %s912_s15 = sshll.u32 %s244_s17, 8  ;;  %s1088_s10 = sshll.u32 %s1427_s25, 8 }
  0x1f   : > { %s270_s11 = scalar_lea.vmem [#allocation6], %s912_s15  ;;  %s245_s13 = scalar_lea.sflag [#allocation4], %s244_s17 }
  0x20   : > { %s278_s3 = sshll.u32 %s270_s11, 4  ;;  %s266_s12 = sand.u32 1, %s1431_s26   ;;  %s279_s3 = int_to_ptr.vmem [resolvable:$true] %s278_s3 }
  0x21   : > { %1152 = dma.hbm_to_vmem [thread:$0]  (!%p1150_p0), %s258_s21, 256, %s260_s9, %s245_s13  }
  0x22   : > { %s275_s18 = scalar_lea.hbm %s1666_s1, %s1088_s10  ;;  %s267_s20 = scalar_lea.sflag [#allocation7], %s266_s12 }
  0x23   : > { %s276_s28 = sshll.u32 %s275_s18, 4  ;;  %s1684_s29 = smov 4   ;;  %s277_s28 = int_to_ptr.hbm [resolvable:$true] %s276_s28 }
  0x24   : > { %s1685_s30 = smov 64   ;;  %290 = sbr.rel (%p1513_p3) target bundleno = 407 (0x197), region = 40 }
  0x25   : > { %1155 = dma.hbm_to_vmem [thread:$0]  (!%p1150_p0), %s277_s28, 4096, %s279_s3, %s267_s20, %s1685_s30, %s1685_s30, %s1684_s29  }
  0x26   : > { %s292_s11 = sand.u32 (!%p1513_p3), 1, %s1415_s22  }
  0x27   : > { %s916_s14 = sshll.u32 (!%p1513_p3), %s292_s11, 4  ;;  %s293_s17 = scalar_lea.sflag (!%p1513_p3), [#allocation4], %s292_s11 }
  0x28   : > { %s1569_s21 = scalar_lea.vmem (!%p1513_p3), [#allocation3], %s916_s14 }
  0x29   : > { %1390 = dma.done.wait (%p1542_p13), %s293_s17, 256  }
  0x2a   : > { %1392 = vsyncadd (%p1542_p13), %s293_s17, 4294967040  ;;  %s302_s23 = sand.u32 1, %s1505_s27   ;;  %s917_s10 = sshll.u32 %s292_s11, 8 }
  0x2b   : > { %s303_s3 = scalar_lea.sflag [#allocation7], %s302_s23  ;;  %s1576_s12 = scalar_lea.vmem [#allocation6], %s917_s10 }
  0x2c   : > { %1394 = dma.done.wait (%p1542_p13), %s303_s3, 4096  }
  0x2d   : > { %1396 = vsyncadd (%p1542_p13), %s303_s3, 4294963200 }
  0x2e   : > { %1398 = dma.done.wait (%p60_p1), [#allocation7], 1024  }
  0x2f   : > { %1400 = vsyncadd (%p60_p1), [#allocation7], 4294966272  ;;  %p919_p2 = scmp.ne.s32.totalorder %s1423_s24, 0 }
  0x31   : > { %346 = sbr.rel (%p919_p2) target bundleno = 56 (0x38), region = 56 }
  0x36   : > { %v1436_v0 = vmov 0.0  }
  0x37   : > { %347 = vst [vmem:[#allocation2] sm:$0xff] %v1436_v0 }
  0x38 PF: > { %v1096_v1 = vld [vmem:[%s1576_s12 + $0x38] sm:$0xff]  ;;  %v1095_v5 = vld [vmem:[%s1576_s12 + $0x30] sm:$0xff]  ;;  %v1094_v9 = vld [vmem:[%s1576_s12 + $0x28] sm:$0xff]  ;;  %p1048_p1 = scmp.ne.s32.totalorder %s1423_s24, 1 }
  0x39   : > { %v1104_v2 = vld [vmem:[%s1576_s12 + $0x78] sm:$0xff]  ;;  %621 = vmatpush.bf16.msra.mxu0 %v1096_v1  ;;  %v1103_v6 = vld [vmem:[%s1576_s12 + $0x70] sm:$0xff]  ;;  %v1102_v10 = vld [vmem:[%s1576_s12 + $0x68] sm:$0xff] }
  0x3a   : > { %v1112_v3 = vld [vmem:[%s1576_s12 + $0xb8] sm:$0xff]  ;;  %634 = vmatpush.bf16.msra.mxu1 %v1104_v2  ;;  %v1111_v7 = vld [vmem:[%s1576_s12 + $0xb0] sm:$0xff]  ;;  %v1110_v11 = vld [vmem:[%s1576_s12 + $0xa8] sm:$0xff] }
  0x3b   : > { %v1120_v4 = vld [vmem:[%s1576_s12 + $0xf8] sm:$0xff]  ;;  %647 = vmatpush.bf16.msra.mxu2 %v1112_v3  ;;  %v1119_v8 = vld [vmem:[%s1576_s12 + $0xf0] sm:$0xff]  ;;  %v1118_v12 = vld [vmem:[%s1576_s12 + $0xe8] sm:$0xff] }
  0x3c   : > { %660 = vmatpush.bf16.msra.mxu3 %v1120_v4  ;;  %v1093_v13 = vld [vmem:[%s1576_s12 + $0x20] sm:$0xff]  ;;  %v1092_v17 = vld [vmem:[%s1576_s12 + $0x18] sm:$0xff]  ;;  %v1091_v21 = vld [vmem:[%s1576_s12 + $0x10] sm:$0xff] }
  0x3d   : > { %622 = vmatpush.bf16.msra.mxu0 %v1095_v5  ;;  %v1101_v14 = vld [vmem:[%s1576_s12 + $0x60] sm:$0xff]  ;;  %v1100_v18 = vld [vmem:[%s1576_s12 + $0x58] sm:$0xff]  ;;  %v1099_v22 = vld [vmem:[%s1576_s12 + $0x50] sm:$0xff] }
  0x3e   : > { %635 = vmatpush.bf16.msra.mxu1 %v1103_v6  ;;  %v1109_v15 = vld [vmem:[%s1576_s12 + $0xa0] sm:$0xff]  ;;  %v1108_v19 = vld [vmem:[%s1576_s12 + $0x98] sm:$0xff]  ;;  %v1107_v23 = vld [vmem:[%s1576_s12 + $0x90] sm:$0xff] }
  0x3f   : > { %648 = vmatpush.bf16.msra.mxu2 %v1111_v7  ;;  %v1117_v16 = vld [vmem:[%s1576_s12 + $0xe0] sm:$0xff]  ;;  %v1116_v20 = vld [vmem:[%s1576_s12 + $0xd8] sm:$0xff]  ;;  %v1115_v24 = vld [vmem:[%s1576_s12 + $0xd0] sm:$0xff] }
  0x40   : > { %661 = vmatpush.bf16.msra.mxu3 %v1119_v8  ;;  %v1090_v25 = vld [vmem:[%s1576_s12 + $0x8] sm:$0xff]  ;;  %v349_v27 = vld [vmem:[%s1569_s21] sm:$0xff]  ;;  %v348_v51 = vld [vmem:[#allocation2] sm:$0xff] }
  0x41   : > { %623 = vmatpush.bf16.msra.mxu0 %v1094_v9  ;;  %v1098_v26 = vld [vmem:[%s1576_s12 + $0x48] sm:$0xff]  ;;  %v417_v31 = vunpack.c.l.b16 %v349_v27  ;;  %v418_v32 = vunpack.c.h.b16 %v349_v27  ;;  %v1089_v33 = vld [vmem:[%s1576_s12] sm:$0xff] }
  0x42   : > { %636 = vmatpush.bf16.msra.mxu1 %v1102_v10  ;;  %v1106_v28 = vld [vmem:[%s1576_s12 + $0x88] sm:$0xff]  ;;  %v1097_v34 = vld [vmem:[%s1576_s12 + $0x40] sm:$0xff] }
  0x43   : > { %649 = vmatpush.bf16.msra.mxu2 %v1110_v11  ;;  %v1114_v29 = vld [vmem:[%s1576_s12 + $0xc8] sm:$0xff]  ;;  %v1105_v37 = vld [vmem:[%s1576_s12 + $0x80] sm:$0xff]  ;;  %v421_v39 = vpack.c.b16 %v417_v31, %v417_v31  ;;  %v422_v40 = vpack.c.b16 %v418_v32, %v418_v32 }
  0x44   : > { %662 = vmatpush.bf16.msra.mxu3 %v1118_v12  ;;  %v350_v30 = vld [vmem:[%s1569_s21 + $0x8] sm:$0xff]  ;;  %v1113_v38 = vld [vmem:[%s1576_s12 + $0xc0] sm:$0xff] }
  0x45   : > { %624 = vmatpush.bf16.msra.mxu0 %v1093_v13  ;;  %v419_v35 = vunpack.c.l.b16 %v350_v30  ;;  %v420_v36 = vunpack.c.h.b16 %v350_v30 }
  0x46   : > { %637 = vmatpush.bf16.msra.mxu1 %v1101_v14 }
  0x47   : > { %650 = vmatpush.bf16.msra.mxu2 %v1109_v15  ;;  %v423_v41 = vpack.c.b16 %v419_v35, %v419_v35  ;;  %v424_v42 = vpack.c.b16 %v420_v36, %v420_v36 }
  0x48   : > { %663 = vmatpush.bf16.msra.mxu3 %v1117_v16 }
  0x49   : > { %625 = vmatpush.bf16.msra.mxu0 %v1092_v17 }
  0x4a   : > { %638 = vmatpush.bf16.msra.mxu1 %v1100_v18 }
  0x4b   : > { %651 = vmatpush.bf16.msra.mxu2 %v1108_v19 }
  0x4c   : > { %664 = vmatpush.bf16.msra.mxu3 %v1116_v20 }
  0x4d   : > { %626 = vmatpush.bf16.msra.mxu0 %v1091_v21 }
  0x4e   : > { %639 = vmatpush.bf16.msra.mxu1 %v1099_v22 }
  0x4f   : > { %652 = vmatpush.bf16.msra.mxu2 %v1107_v23 }
  0x50   : > { %665 = vmatpush.bf16.msra.mxu3 %v1115_v24 }
  0x51   : > { %627 = vmatpush.bf16.msra.mxu0 %v1090_v25 }
  0x52   : > { %640 = vmatpush.bf16.msra.mxu1 %v1098_v26 }
  0x53   : > { %653 = vmatpush.bf16.msra.mxu2 %v1106_v28 }
  0x54   : > { %666 = vmatpush.bf16.msra.mxu3 %v1114_v29 }
  0x55   : > { %628 = vmatpush.bf16.msra.mxu0 %v1089_v33 }
  0x56   : > { %641 = vmatpush.bf16.msra.mxu1 %v1097_v34 }
  0x57   : > { %654 = vmatpush.bf16.msra.mxu2 %v1105_v37 }
  0x58   : > { %667 = vmatpush.bf16.msra.mxu3 %v1113_v38  ;;  %629 = vmatmul.bf16.vlgmr.msra.gmra.mxu0 %v421_v39 }
  0x59   : > { %642 = vmatmul.bf16.vlgmr.msra.gmra.mxu1 %v422_v40 }
  0x5a   : > { %655 = vmatmul.bf16.vlgmr.msra.gmra.mxu2 %v423_v41 }
  0x5b   : > { %668 = vmatmul.bf16.vlgmr.msra.gmra.mxu3 %v424_v42 }
  0xd5   : > { %v630_v43 = vpop.f32.mrf.mxu0 }
  0xd6   : > { %v643_v44 = vpop.f32.mrf.mxu1 }
  0xd7   : > { %v644_v45 = vadd.f32 %v643_v44, %v630_v43 }
  0xdd   : > { %v656_v46 = vpop.f32.mrf.mxu2  ;;  %v632_v49 = vpop.f32.mrf.mxu0 }
  0xde   : > { %v669_v47 = vpop.f32.mrf.mxu3  ;;  %v657_v48 = vadd.f32 %v656_v46, %v644_v45  ;;  %v645_v50 = vpop.f32.mrf.mxu1 }
  0xe0   : > { %v670_v52 = vadd.f32 %v669_v47, %v657_v48 }
  0xe2   : > { %v673_v53 = vadd.f32 %v670_v52, %v348_v51  ;;  %678 = sbr.rel (%p1048_p1) target bundleno = 397 (0x18d), region = 60 }
  0xe4   : > { %674 = vst [vmem:[#allocation2] sm:$0xff] %v673_v53 }
  0xe5   : > { %v658_v54 = vpop.f32.mrf.mxu2 }
  0xe6   : > { %v671_v55 = vpop.f32.mrf.mxu3 }
  0xe7   : > { %v1128_v56 = vld [vmem:[#allocation8 + $0x38] sm:$0xff]  ;;  %v1127_v57 = vld [vmem:[#allocation8 + $0x30] sm:$0xff]  ;;  %v1126_v61 = vld [vmem:[#allocation8 + $0x28] sm:$0xff] }
  0xe8   : > { %756 = vmatpush.bf16.msra.mxu0 %v1128_v56  ;;  %v1217_v59 = vld [vmem:[%s1667_s2] ss:$0 sm:$0xff]  ;;  %v1125_v63 = vld [vmem:[#allocation8 + $0x20] sm:$0xff]  ;;  %v1123_v1 = vld [vmem:[#allocation8 + $0x10] sm:$0xff] }
  0xe9   : > { %v1124_v0 = vld [vmem:[#allocation8 + $0x18] sm:$0xff]  ;;  %v1122_v2 = vld [vmem:[#allocation8 + $0x8] sm:$0xff]  ;;  %v1121_v3 = vld [vmem:[#allocation8] sm:$0xff] }
  0xea   : > { %v1218_v5 = vld [vmem:[%s1669_s4] ss:$0 sm:$0xff] }
  0xeb   : > { %v679_v58 = vld [vmem:[#allocation2] sm:$0xff] }
  0xec   : > { %v684_v60 = vadd.f32 %v1217_v59, %v679_v58  ;;  %757 = vmatpush.bf16.msra.mxu0 %v1127_v57 }
  0xee   : > { %v685_v62 = vmax.f32 %v684_v60, 0.0 }
  0xf0   : > { %686 = vst [vmem:[#allocation10] sm:$0xff] %v685_v62  ;;  %758 = vmatpush.bf16.msra.mxu0 %v1126_v61  ;;  %v687_v4 = vpack.c.bf16 %v685_v62, %v685_v62 }
  0xf4   : > { %759 = vmatpush.bf16.msra.mxu0 %v1125_v63 }
  0xf8   : > { %760 = vmatpush.bf16.msra.mxu0 %v1124_v0 }
  0xfc   : > { %761 = vmatpush.bf16.msra.mxu0 %v1123_v1 }
 0x100   : > { %762 = vmatpush.bf16.msra.mxu0 %v1122_v2 }
 0x104   : > { %763 = vmatpush.bf16.msra.mxu0 %v1121_v3 }
 0x107   : > { %764 = vmatmul.bf16.vlgmr.msra.gmra.mxu0 %v687_v4 }
 0x184   : > { %v765_v6 = vpop.f32.mrf.mxu0 }
 0x185   : > { %v766_v7 = vadd.f32 %v1218_v5, %v765_v6 }
 0x187   : > { %769 = vst [vmem:[#allocation9] sm:$0xff] %v766_v7 }
 0x18c   : > { %v767_v8 = vpop.f32.mrf.mxu0 }
 0x18d PF: > { %p1159_p3 = scmp.eq.s32.totalorder %s1505_s27, 1  ;;  %s780_s15 = sshll.u32 %s1670_s5, 4  ;;  %s781_s15 = int_to_ptr.hbm [resolvable:$true] %s780_s15 }
 0x18e   : > { %s1437_s13 = smov [#allocation9]   ;;  %s1438_s28 = smov [#allocation10]  }
 0x18f   : > { %s778_s18 = sshll.u32 %s1437_s13, 4  ;;  %s792_s20 = sshll.u32 %s1438_s28, 4  ;;  %s779_s18 = int_to_ptr.vmem [resolvable:$true] %s778_s18  ;;  %s793_s20 = int_to_ptr.vmem [resolvable:$true] %s792_s20 }
 0x190   : > { %1138 = dma.vmem_to_hbm [thread:$0]  (%p1159_p3), %s779_s18, 128, %s781_s15, [#allocation5]  }
 0x191   : > { %s794_s11 = sshll.u32 %s1671_s6, 4  ;;  %s795_s11 = int_to_ptr.hbm [resolvable:$true] %s794_s11 }
 0x192   : > { %1140 = dma.vmem_to_hbm [thread:$0]  (%p1159_p3), %s793_s20, 128, %s795_s11, [#allocation11]  }
 0x193   : > { %1402 = dma.done.wait (%p1159_p3), [#allocation5], 128  }
 0x194   : > { %1404 = vsyncadd (%p1159_p3), [#allocation5], 4294967168 }
 0x195   : > { %1406 = dma.done.wait (%p1159_p3), [#allocation11], 128  }
 0x196   : > { %1408 = vsyncadd (%p1159_p3), [#allocation11], 4294967168 }
 0x197 PF: > { %s25_s26 = sadd.s32 1, %s1431_s26   ;;  %s1686_s14 = sld [smem:[#allocation17_spill]] }
 0x198   : > { %p22_p4 = scmp.ge.s32.totalorder %s25_s26, 4   ;;  %s1687_s23 = sld [smem:[#allocation19_spill]] }
 0x199   : > { %s1688_s17 = sld [smem:[#allocation18_spill]]  ;;  %s1689_s21 = smov %s1415_s22 }
 0x19a   : > { %s1691_s24 = smov %s1427_s25 }
 0x19b   :  { %24 = sbr.rel (!%p22_p4) target bundleno = 10 (0xa), region = 112 }
 0x19d   : > { %s1690_s22 = smov %s1686_s14 }
 0x19f   : > { %s1692_s25 = smov %s1688_s17 }
 0x1a0   :  { %813 = vsyncpa [#allocation4], 1 }
 0x1a1   :  { %815 = vsyncpa [#allocation4 + $0x1], 1 }
 0x1a2   :  { %816 = vsyncpa [#allocation7], 1 }
 0x1a3   :  { %818 = vsyncpa [#allocation7 + $0x1], 1 }
 0x1a4   :  { %819 = vsyncpa [#allocation5], 1 }
 0x1a5   :  { %821 = vsyncpa [#allocation5 + $0x1], 1 }
 0x1a6   :  { %822 = vsyncpa [#allocation11], 1 }

</bundles_post_ra>
